<compile_context>
chip_gen: v6e
topology: v6e:2x2x1
jax: 0.10.0
libtpu: 0.0.40
codegen_flags: <defaults>
</compile_context>

<pallas_src>
import math

import jax
import jax.numpy as jnp
from jax.experimental import pallas as pl
from jax.experimental.pallas import tpu as pltpu

D_MODEL = 32
NUM_HEADS = 4
HEAD_DIM = D_MODEL // NUM_HEADS
MAX_WINDOW = 120
MIN_WINDOW = 24
ALPHA_INIT = 0.1


def _dwsa_kernel(half_ref,                # scalar prefetch: (1,) int32 in SMEM
                 x_ref,                   # (Bt, S, D) f32
                 wq_ref, bq_ref,          # (D, D) bf16 (1/sqrt(hd) folded), (1, D) f32
                 wk_ref, bk_ref,          # (D, D) bf16, (1, D) f32
                 wv_ref, bv_ref,          # (D, D) bf16, (1, D) f32
                 wcomb_ref, bfc_ref,      # (D, D) bf16 = blockdiag(W_o) @ Wfc^T, (1, D) f32
                 out_ref):                # (Bt, S, D) f32
    bt, s, d = x_ref.shape

    xf = x_ref[...].reshape(bt * s, d).astype(jnp.bfloat16)

    # QKV projections over all Bt*S rows at once (bf16 MXU, f32 accumulate + bias).
    q = jnp.dot(xf, wq_ref[...], preferred_element_type=jnp.float32) + bq_ref[...]
    k = jnp.dot(xf, wk_ref[...], preferred_element_type=jnp.float32) + bk_ref[...]
    v = jnp.dot(xf, wv_ref[...], preferred_element_type=jnp.float32) + bv_ref[...]

    # Dynamic band mask generated in-kernel from the scalar half-window.
    half = half_ref[0]
    row = jax.lax.broadcasted_iota(jnp.int32, (s, s), 0)
    col = jax.lax.broadcasted_iota(jnp.int32, (s, s), 1)
    in_band = jnp.abs(row - col) <= half                          # (S, S) bool

    def heads(z):                                                 # (S, D) -> (H, S, hd)
        return jnp.stack(
            [z[:, h * HEAD_DIM:(h + 1) * HEAD_DIM] for h in range(NUM_HEADS)],
            axis=0).astype(jnp.bfloat16)

    o_rows = []
    for b in range(bt):                                           # static, Bt is small
        lo = b * s
        qh = heads(q[lo:lo + s, :])                               # (H, S, hd)
        kh = heads(k[lo:lo + s, :])
        vh = heads(v[lo:lo + s, :])

        # One head-batched MXU call for all heads' scores (scale already in Wq).
        sc = jnp.einsum('hqd,hkd->hqk', qh, kh,
                        preferred_element_type=jnp.float32)       # (H, S, S)
        sc = jnp.where(in_band[None, :, :], sc, -jnp.inf)

        # Softmax in f32; divide on the EUP via approximate reciprocal.
        m = jnp.max(sc, axis=-1, keepdims=True)
        e = jnp.exp(sc - m)
        p = e * pl.reciprocal(jnp.sum(e, axis=-1, keepdims=True), approx=True)

        o = jnp.einsum('hqk,hkd->hqd', p.astype(jnp.bfloat16), vh,
                       preferred_element_type=jnp.float32)        # (H, S, hd)
        # heads back to D columns (head-major, matches PyTorch permute+view)
        o_rows.append(jnp.concatenate([o[h] for h in range(NUM_HEADS)], axis=-1))

    o_all = jnp.concatenate(o_rows, axis=0)                       # (Bt*S, D)

    # Fused W_o + fc_out projection: single (Bt*S, D) @ (D, D) matmul.
    y = jnp.dot(o_all.astype(jnp.bfloat16), wcomb_ref[...],
                preferred_element_type=jnp.float32) + bfc_ref[...]
    out_ref[...] = y.reshape(bt, s, d)


def dwsa_attention(x, half_window, params, *, batch_tile=None):
    B, S, D = x.shape
    bt = B if batch_tile is None else batch_tile
    assert B % bt == 0, "batch_tile must divide batch"

    data_map = lambda g, hw: (g, 0, 0)
    w_map = lambda g, hw: (0, 0)

    in_specs = [
        pl.BlockSpec((bt, S, D), data_map),     # x
        pl.BlockSpec((D, D), w_map),            # Wq^T * 1/sqrt(hd)  (bf16)
        pl.BlockSpec((1, D), w_map),            # bq * 1/sqrt(hd)
        pl.BlockSpec((D, D), w_map),            # Wk^T
        pl.BlockSpec((1, D), w_map),            # bk
        pl.BlockSpec((D, D), w_map),            # Wv^T
        pl.BlockSpec((1, D), w_map),            # bv
        pl.BlockSpec((D, D), w_map),            # Wcomb = blockdiag(W_o) @ Wfc^T
        pl.BlockSpec((1, D), w_map),            # bfc
    ]
    out_specs = pl.BlockSpec((bt, S, D), data_map)

    return pl.pallas_call(
        _dwsa_kernel,
        out_shape=jax.ShapeDtypeStruct((B, S, D), jnp.float32),
        grid_spec=pltpu.PrefetchScalarGridSpec(
            num_scalar_prefetch=1,
            grid=(B // bt,),
            in_specs=in_specs,
            out_specs=out_specs,
        ),
        compiler_params=pltpu.CompilerParams(
            dimension_semantics=("parallel",),   # batch tiles independent (v7x megacore)
        ),
    )(half_window, x,
      params["wq_s"], params["bq_s"],
      params["wk_t"], params["bk"],
      params["wv_t"], params["bv"],
      params["wcomb"], params["bfc"])


def forward(x, params, state):
    """Mirrors DynamicWindowSparseAttention.forward (register_buffers live in `state`)."""
    x = x.astype(jnp.float32)

    # _calc_fluctuation
    curr_fluct = jnp.abs(x[:, -1] - x[:, -2])                     # (B, D)

    # _update_ewma (reference's print(alpha) omitted)
    alpha = jax.nn.sigmoid(params["alpha"])
    step = state["step"]
    fluct_step_value = curr_fluct[0, step % curr_fluct.shape[1]]
    if step == 0:
        ewma_prev = fluct_step_value
    else:
        ewma_prev = alpha * fluct_step_value + (1.0 - alpha) * curr_fluct.mean()
    new_state = {"ewma_prev": ewma_prev, "step": step + 1}

    # _get_window_size: int() truncation done on-device (same value, no host sync).
    curr_mean = curr_fluct.mean()
    window_signal = alpha * curr_mean + (1.0 - alpha) * jnp.mean(ewma_prev)
    scale_factor = jax.nn.sigmoid(window_signal)
    window_size = (MIN_WINDOW
                   + (MAX_WINDOW - MIN_WINDOW) * scale_factor).astype(jnp.int32)
    half_window = (window_size // 2).reshape(1)                   # (1,) int32 scalar prefetch

    out = dwsa_attention(x, half_window, params)
    return out, new_state


def init_params(key):
    """Raw (PyTorch-layout) parameters."""
    ks = jax.random.split(key, 5)

    def linear(k):
        kw, kb = jax.random.split(k)
        w = jax.random.normal(kw, (D_MODEL, D_MODEL), jnp.float32) / math.sqrt(D_MODEL)
        b = jax.random.normal(kb, (1, D_MODEL), jnp.float32) * 0.01
        return w, b

    wq, bq = linear(ks[0])
    wk, bk = linear(ks[1])
    wv, bv = linear(ks[2])
    wfc, bfc = linear(ks[3])
    w_o = jax.random.normal(ks[4], (NUM_HEADS, HEAD_DIM, HEAD_DIM), jnp.float32)
    return dict(alpha=jnp.float32(ALPHA_INIT),
                wq=wq, bq=bq, wk=wk, bk=bk, wv=wv, bv=bv,
                wfc=wfc, bfc=bfc, w_o=w_o)


def fold_params(raw):
    """Host-side exact algebraic folds + bf16 casts of the MXU weights."""
    inv = 1.0 / math.sqrt(HEAD_DIM)

    # block_diag(W_o) @ Wfc^T : fuses the per-head W_o einsum with fc_out.
    blk = jnp.zeros((D_MODEL, D_MODEL), jnp.float32)
    for h in range(NUM_HEADS):
        lo = h * HEAD_DIM
        blk = blk.at[lo:lo + HEAD_DIM, lo:lo + HEAD_DIM].set(raw["w_o"][h])
    wcomb = blk @ raw["wfc"].T

    return dict(
        alpha=raw["alpha"],
        wq_s=(raw["wq"].T * inv).astype(jnp.bfloat16),   # 1/sqrt(hd) folded into Wq
        bq_s=raw["bq"] * inv,
        wk_t=raw["wk"].T.astype(jnp.bfloat16),
        bk=raw["bk"],
        wv_t=raw["wv"].T.astype(jnp.bfloat16),
        bv=raw["bv"],
        wcomb=wcomb.astype(jnp.bfloat16),
        bfc=raw["bfc"],
    )


if __name__ == "__main__":
    key = jax.random.PRNGKey(0)
    pkey, xkey = jax.random.split(key)
    params = fold_params(init_params(pkey))

    B, S = 2, 8
    x = jax.random.normal(xkey, (B, S, D_MODEL), jnp.float32)

    state = {"ewma_prev": jnp.zeros(()), "step": 0}   # register_buffer equivalents
    out, state = forward(x, params, state)
    jax.block_until_ready(out)
    assert out.shape == (B, S, D_MODEL)
    assert bool(jnp.all(jnp.isfinite(out)))
    print("KERNEL_OK")
</pallas_src>

<mosaic_0001>
module attributes {stable_mosaic.version = 11 : i64} {
  func.func @_dwsa_kernel(%arg0: i32, %arg1: memref<1xi32, #tpu.memory_space<smem>>, %arg2: memref<2x8x32xf32, #tpu.memory_space<vmem>>, %arg3: memref<32x32xbf16, #tpu.memory_space<vmem>>, %arg4: memref<1x32xf32, #tpu.memory_space<vmem>>, %arg5: memref<32x32xbf16, #tpu.memory_space<vmem>>, %arg6: memref<1x32xf32, #tpu.memory_space<vmem>>, %arg7: memref<32x32xbf16, #tpu.memory_space<vmem>>, %arg8: memref<1x32xf32, #tpu.memory_space<vmem>>, %arg9: memref<32x32xbf16, #tpu.memory_space<vmem>>, %arg10: memref<1x32xf32, #tpu.memory_space<vmem>>, %arg11: memref<2x8x32xf32, #tpu.memory_space<vmem>>) attributes {dimension_semantics = [#tpu.dimension_semantics<parallel>], iteration_bounds = array<i64: 1>, scalar_prefetch = 1 : i64, scratch_operands = 0 : i64, tpu.core_type = #tpu.core_type<tc>, window_params = [{transform_indices = @transform_0, window_bounds = array<i64: 2, 8, 32>}, {pipeline_mode = #tpu.pipeline_mode<synchronous>, transform_indices = @transform_1, window_bounds = array<i64: 32, 32>}, {pipeline_mode = #tpu.pipeline_mode<synchronous>, transform_indices = @transform_2, window_bounds = array<i64: 1, 32>}, {pipeline_mode = #tpu.pipeline_mode<synchronous>, transform_indices = @transform_3, window_bounds = array<i64: 32, 32>}, {pipeline_mode = #tpu.pipeline_mode<synchronous>, transform_indices = @transform_4, window_bounds = array<i64: 1, 32>}, {pipeline_mode = #tpu.pipeline_mode<synchronous>, transform_indices = @transform_5, window_bounds = array<i64: 32, 32>}, {pipeline_mode = #tpu.pipeline_mode<synchronous>, transform_indices = @transform_6, window_bounds = array<i64: 1, 32>}, {pipeline_mode = #tpu.pipeline_mode<synchronous>, transform_indices = @transform_7, window_bounds = array<i64: 32, 32>}, {pipeline_mode = #tpu.pipeline_mode<synchronous>, transform_indices = @transform_8, window_bounds = array<i64: 1, 32>}, {transform_indices = @transform_9, window_bounds = array<i64: 2, 8, 32>}]} {
    %c0 = arith.constant 0 : index
    %c0_0 = arith.constant 0 : index
    %c0_1 = arith.constant 0 : index
    %0 = vector.load %arg2[%c0, %c0_0, %c0_1] : memref<2x8x32xf32, #tpu.memory_space<vmem>>, vector<2x8x32xf32>
    %1 = vector.shape_cast %0 : vector<2x8x32xf32> to vector<16x32xf32>
    %2 = arith.truncf %1 : vector<16x32xf32> to vector<16x32xbf16>
    %c0_2 = arith.constant 0 : index
    %c0_3 = arith.constant 0 : index
    %3 = vector.load %arg3[%c0_2, %c0_3] : memref<32x32xbf16, #tpu.memory_space<vmem>>, vector<32x32xbf16>
    %cst = arith.constant dense<0.000000e+00> : vector<16x32xf32>
    %4 = tpu.matmul %2, %3, %cst {dimension_numbers = #tpu.dot_dimension_numbers<[1], [0], [0], [1], [0, 0, 1, 1], [], []>} : vector<16x32xbf16>, vector<32x32xbf16>, vector<16x32xf32> -> vector<16x32xf32>
    %c0_4 = arith.constant 0 : index
    %c0_5 = arith.constant 0 : index
    %5 = vector.load %arg4[%c0_4, %c0_5] : memref<1x32xf32, #tpu.memory_space<vmem>>, vector<1x32xf32>
    %6 = vector.broadcast %5 : vector<1x32xf32> to vector<16x32xf32>
    %7 = arith.addf %4, %6 : vector<16x32xf32>
    %c0_6 = arith.constant 0 : index
    %c0_7 = arith.constant 0 : index
    %8 = vector.load %arg5[%c0_6, %c0_7] : memref<32x32xbf16, #tpu.memory_space<vmem>>, vector<32x32xbf16>
    %cst_8 = arith.constant dense<0.000000e+00> : vector<16x32xf32>
    %9 = tpu.matmul %2, %8, %cst_8 {dimension_numbers = #tpu.dot_dimension_numbers<[1], [0], [0], [1], [0, 0, 1, 1], [], []>} : vector<16x32xbf16>, vector<32x32xbf16>, vector<16x32xf32> -> vector<16x32xf32>
    %c0_9 = arith.constant 0 : index
    %c0_10 = arith.constant 0 : index
    %10 = vector.load %arg6[%c0_9, %c0_10] : memref<1x32xf32, #tpu.memory_space<vmem>>, vector<1x32xf32>
    %11 = vector.broadcast %10 : vector<1x32xf32> to vector<16x32xf32>
    %12 = arith.addf %9, %11 : vector<16x32xf32>
    %c0_11 = arith.constant 0 : index
    %c0_12 = arith.constant 0 : index
    %13 = vector.load %arg7[%c0_11, %c0_12] : memref<32x32xbf16, #tpu.memory_space<vmem>>, vector<32x32xbf16>
    %cst_13 = arith.constant dense<0.000000e+00> : vector<16x32xf32>
    %14 = tpu.matmul %2, %13, %cst_13 {dimension_numbers = #tpu.dot_dimension_numbers<[1], [0], [0], [1], [0, 0, 1, 1], [], []>} : vector<16x32xbf16>, vector<32x32xbf16>, vector<16x32xf32> -> vector<16x32xf32>
    %c0_14 = arith.constant 0 : index
    %c0_15 = arith.constant 0 : index
    %15 = vector.load %arg8[%c0_14, %c0_15] : memref<1x32xf32, #tpu.memory_space<vmem>>, vector<1x32xf32>
    %16 = vector.broadcast %15 : vector<1x32xf32> to vector<16x32xf32>
    %17 = arith.addf %14, %16 : vector<16x32xf32>
    %c0_16 = arith.constant 0 : index
    %18 = memref.load %arg1[%c0_16] : memref<1xi32, #tpu.memory_space<smem>>
    %19 = tpu.iota {dimensions = array<i32: 0>} : vector<8x8xi32>
    %20 = tpu.iota {dimensions = array<i32: 1>} : vector<8x8xi32>
    %21 = arith.subi %19, %20 : vector<8x8xi32>
    %22 = math.absi %21 : vector<8x8xi32>
    %23 = vector.broadcast %18 : i32 to vector<8x8xi32>
    %24 = arith.cmpi sle, %22, %23 : vector<8x8xi32>
    %25 = vector.extract_strided_slice %7 {offsets = [0, 0], sizes = [8, 32], strides = [1, 1]} : vector<16x32xf32> to vector<8x32xf32>
    %26 = vector.extract_strided_slice %25 {offsets = [0, 0], sizes = [8, 8], strides = [1, 1]} : vector<8x32xf32> to vector<8x8xf32>
    %27 = vector.extract_strided_slice %25 {offsets = [0, 8], sizes = [8, 8], strides = [1, 1]} : vector<8x32xf32> to vector<8x8xf32>
    %28 = vector.extract_strided_slice %25 {offsets = [0, 16], sizes = [8, 8], strides = [1, 1]} : vector<8x32xf32> to vector<8x8xf32>
    %29 = vector.extract_strided_slice %25 {offsets = [0, 24], sizes = [8, 8], strides = [1, 1]} : vector<8x32xf32> to vector<8x8xf32>
    %30 = vector.shape_cast %26 : vector<8x8xf32> to vector<1x8x8xf32>
    %31 = vector.shape_cast %27 : vector<8x8xf32> to vector<1x8x8xf32>
    %32 = vector.shape_cast %28 : vector<8x8xf32> to vector<1x8x8xf32>
    %33 = vector.shape_cast %29 : vector<8x8xf32> to vector<1x8x8xf32>
    %34 = tpu.concatenate %30, %31, %32, %33 in 0 : vector<1x8x8xf32>, vector<1x8x8xf32>, vector<1x8x8xf32>, vector<1x8x8xf32> -> vector<4x8x8xf32>
    %35 = arith.truncf %34 : vector<4x8x8xf32> to vector<4x8x8xbf16>
    %36 = vector.extract_strided_slice %12 {offsets = [0, 0], sizes = [8, 32], strides = [1, 1]} : vector<16x32xf32> to vector<8x32xf32>
    %37 = vector.extract_strided_slice %36 {offsets = [0, 0], sizes = [8, 8], strides = [1, 1]} : vector<8x32xf32> to vector<8x8xf32>
    %38 = vector.extract_strided_slice %36 {offsets = [0, 8], sizes = [8, 8], strides = [1, 1]} : vector<8x32xf32> to vector<8x8xf32>
    %39 = vector.extract_strided_slice %36 {offsets = [0, 16], sizes = [8, 8], strides = [1, 1]} : vector<8x32xf32> to vector<8x8xf32>
    %40 = vector.extract_strided_slice %36 {offsets = [0, 24], sizes = [8, 8], strides = [1, 1]} : vector<8x32xf32> to vector<8x8xf32>
    %41 = vector.shape_cast %37 : vector<8x8xf32> to vector<1x8x8xf32>
    %42 = vector.shape_cast %38 : vector<8x8xf32> to vector<1x8x8xf32>
    %43 = vector.shape_cast %39 : vector<8x8xf32> to vector<1x8x8xf32>
    %44 = vector.shape_cast %40 : vector<8x8xf32> to vector<1x8x8xf32>
    %45 = tpu.concatenate %41, %42, %43, %44 in 0 : vector<1x8x8xf32>, vector<1x8x8xf32>, vector<1x8x8xf32>, vector<1x8x8xf32> -> vector<4x8x8xf32>
    %46 = arith.truncf %45 : vector<4x8x8xf32> to vector<4x8x8xbf16>
    %47 = vector.extract_strided_slice %17 {offsets = [0, 0], sizes = [8, 32], strides = [1, 1]} : vector<16x32xf32> to vector<8x32xf32>
    %48 = vector.extract_strided_slice %47 {offsets = [0, 0], sizes = [8, 8], strides = [1, 1]} : vector<8x32xf32> to vector<8x8xf32>
    %49 = vector.extract_strided_slice %47 {offsets = [0, 8], sizes = [8, 8], strides = [1, 1]} : vector<8x32xf32> to vector<8x8xf32>
    %50 = vector.extract_strided_slice %47 {offsets = [0, 16], sizes = [8, 8], strides = [1, 1]} : vector<8x32xf32> to vector<8x8xf32>
    %51 = vector.extract_strided_slice %47 {offsets = [0, 24], sizes = [8, 8], strides = [1, 1]} : vector<8x32xf32> to vector<8x8xf32>
    %52 = vector.shape_cast %48 : vector<8x8xf32> to vector<1x8x8xf32>
    %53 = vector.shape_cast %49 : vector<8x8xf32> to vector<1x8x8xf32>
    %54 = vector.shape_cast %50 : vector<8x8xf32> to vector<1x8x8xf32>
    %55 = vector.shape_cast %51 : vector<8x8xf32> to vector<1x8x8xf32>
    %56 = tpu.concatenate %52, %53, %54, %55 in 0 : vector<1x8x8xf32>, vector<1x8x8xf32>, vector<1x8x8xf32>, vector<1x8x8xf32> -> vector<4x8x8xf32>
    %57 = arith.truncf %56 : vector<4x8x8xf32> to vector<4x8x8xbf16>
    "tpu.trace_start"() <{level = 10 : i32, message = "hqd,hkd->hqk"}> : () -> ()
    %cst_17 = arith.constant dense<0.000000e+00> : vector<4x8x8xf32>
    %58 = tpu.matmul %35, %46, %cst_17 {dimension_numbers = #tpu.dot_dimension_numbers<[2], [2], [1], [1], [0, 0, 0, 1, 1, 1], [0], [0]>} : vector<4x8x8xbf16>, vector<4x8x8xbf16>, vector<4x8x8xf32> -> vector<4x8x8xf32>
    "tpu.trace_stop"() : () -> ()
    %59 = vector.shape_cast %24 : vector<8x8xi1> to vector<1x8x8xi1>
    %cst_18 = arith.constant 0xFF800000 : f32
    %60 = vector.shape_cast %59 : vector<1x8x8xi1> to vector<1x8x8xi1>
    %61 = vector.broadcast %60 : vector<1x8x8xi1> to vector<4x8x8xi1>
    %62 = vector.broadcast %cst_18 : f32 to vector<4x8x8xf32>
    %63 = arith.select %61, %58, %62 : vector<4x8x8xi1>, vector<4x8x8xf32>
    %cst_19 = arith.constant dense<0xFF800000> : vector<4x8xf32>
    %64 = vector.multi_reduction <maximumf>, %63, %cst_19 [2] : vector<4x8x8xf32> to vector<4x8xf32>
    %65 = vector.shape_cast %64 : vector<4x8xf32> to vector<4x8x1xf32>
    %66 = vector.broadcast %65 : vector<4x8x1xf32> to vector<4x8x8xf32>
    %67 = arith.subf %63, %66 : vector<4x8x8xf32>
    %68 = math.exp %67 : vector<4x8x8xf32>
    %cst_20 = arith.constant dense<0.000000e+00> : vector<4x8xf32>
    %69 = vector.multi_reduction <add>, %68, %cst_20 [2] : vector<4x8x8xf32> to vector<4x8xf32>
    %70 = vector.shape_cast %69 : vector<4x8xf32> to vector<4x8x1xf32>
    %71 = tpu.reciprocal %70 {approx = true} : vector<4x8x1xf32> -> vector<4x8x1xf32>
    %72 = vector.broadcast %71 : vector<4x8x1xf32> to vector<4x8x8xf32>
    %73 = arith.mulf %68, %72 : vector<4x8x8xf32>
    %74 = arith.truncf %73 : vector<4x8x8xf32> to vector<4x8x8xbf16>
    "tpu.trace_start"() <{level = 10 : i32, message = "hqk,hkd->hqd"}> : () -> ()
    %cst_21 = arith.constant dense<0.000000e+00> : vector<4x8x8xf32>
    %75 = tpu.matmul %74, %57, %cst_21 {dimension_numbers = #tpu.dot_dimension_numbers<[2], [1], [1], [2], [0, 0, 0, 1, 1, 2], [0], [0]>} : vector<4x8x8xbf16>, vector<4x8x8xbf16>, vector<4x8x8xf32> -> vector<4x8x8xf32>
    "tpu.trace_stop"() : () -> ()
    %76 = vector.extract_strided_slice %75 {offsets = [0, 0, 0], sizes = [1, 8, 8], strides = [1, 1, 1]} : vector<4x8x8xf32> to vector<1x8x8xf32>
    %77 = vector.shape_cast %76 : vector<1x8x8xf32> to vector<8x8xf32>
    %78 = vector.extract_strided_slice %75 {offsets = [1, 0, 0], sizes = [1, 8, 8], strides = [1, 1, 1]} : vector<4x8x8xf32> to vector<1x8x8xf32>
    %79 = vector.shape_cast %78 : vector<1x8x8xf32> to vector<8x8xf32>
    %80 = vector.extract_strided_slice %75 {offsets = [2, 0, 0], sizes = [1, 8, 8], strides = [1, 1, 1]} : vector<4x8x8xf32> to vector<1x8x8xf32>
    %81 = vector.shape_cast %80 : vector<1x8x8xf32> to vector<8x8xf32>
    %82 = vector.extract_strided_slice %75 {offsets = [3, 0, 0], sizes = [1, 8, 8], strides = [1, 1, 1]} : vector<4x8x8xf32> to vector<1x8x8xf32>
    %83 = vector.shape_cast %82 : vector<1x8x8xf32> to vector<8x8xf32>
    %84 = tpu.concatenate %77, %79, %81, %83 in 1 : vector<8x8xf32>, vector<8x8xf32>, vector<8x8xf32>, vector<8x8xf32> -> vector<8x32xf32>
    %85 = vector.extract_strided_slice %7 {offsets = [8, 0], sizes = [8, 32], strides = [1, 1]} : vector<16x32xf32> to vector<8x32xf32>
    %86 = vector.extract_strided_slice %85 {offsets = [0, 0], sizes = [8, 8], strides = [1, 1]} : vector<8x32xf32> to vector<8x8xf32>
    %87 = vector.extract_strided_slice %85 {offsets = [0, 8], sizes = [8, 8], strides = [1, 1]} : vector<8x32xf32> to vector<8x8xf32>
    %88 = vector.extract_strided_slice %85 {offsets = [0, 16], sizes = [8, 8], strides = [1, 1]} : vector<8x32xf32> to vector<8x8xf32>
    %89 = vector.extract_strided_slice %85 {offsets = [0, 24], sizes = [8, 8], strides = [1, 1]} : vector<8x32xf32> to vector<8x8xf32>
    %90 = vector.shape_cast %86 : vector<8x8xf32> to vector<1x8x8xf32>
    %91 = vector.shape_cast %87 : vector<8x8xf32> to vector<1x8x8xf32>
    %92 = vector.shape_cast %88 : vector<8x8xf32> to vector<1x8x8xf32>
    %93 = vector.shape_cast %89 : vector<8x8xf32> to vector<1x8x8xf32>
    %94 = tpu.concatenate %90, %91, %92, %93 in 0 : vector<1x8x8xf32>, vector<1x8x8xf32>, vector<1x8x8xf32>, vector<1x8x8xf32> -> vector<4x8x8xf32>
    %95 = arith.truncf %94 : vector<4x8x8xf32> to vector<4x8x8xbf16>
    %96 = vector.extract_strided_slice %12 {offsets = [8, 0], sizes = [8, 32], strides = [1, 1]} : vector<16x32xf32> to vector<8x32xf32>
    %97 = vector.extract_strided_slice %96 {offsets = [0, 0], sizes = [8, 8], strides = [1, 1]} : vector<8x32xf32> to vector<8x8xf32>
    %98 = vector.extract_strided_slice %96 {offsets = [0, 8], sizes = [8, 8], strides = [1, 1]} : vector<8x32xf32> to vector<8x8xf32>
    %99 = vector.extract_strided_slice %96 {offsets = [0, 16], sizes = [8, 8], strides = [1, 1]} : vector<8x32xf32> to vector<8x8xf32>
    %100 = vector.extract_strided_slice %96 {offsets = [0, 24], sizes = [8, 8], strides = [1, 1]} : vector<8x32xf32> to vector<8x8xf32>
    %101 = vector.shape_cast %97 : vector<8x8xf32> to vector<1x8x8xf32>
    %102 = vector.shape_cast %98 : vector<8x8xf32> to vector<1x8x8xf32>
    %103 = vector.shape_cast %99 : vector<8x8xf32> to vector<1x8x8xf32>
    %104 = vector.shape_cast %100 : vector<8x8xf32> to vector<1x8x8xf32>
    %105 = tpu.concatenate %101, %102, %103, %104 in 0 : vector<1x8x8xf32>, vector<1x8x8xf32>, vector<1x8x8xf32>, vector<1x8x8xf32> -> vector<4x8x8xf32>
    %106 = arith.truncf %105 : vector<4x8x8xf32> to vector<4x8x8xbf16>
    %107 = vector.extract_strided_slice %17 {offsets = [8, 0], sizes = [8, 32], strides = [1, 1]} : vector<16x32xf32> to vector<8x32xf32>
    %108 = vector.extract_strided_slice %107 {offsets = [0, 0], sizes = [8, 8], strides = [1, 1]} : vector<8x32xf32> to vector<8x8xf32>
    %109 = vector.extract_strided_slice %107 {offsets = [0, 8], sizes = [8, 8], strides = [1, 1]} : vector<8x32xf32> to vector<8x8xf32>
    %110 = vector.extract_strided_slice %107 {offsets = [0, 16], sizes = [8, 8], strides = [1, 1]} : vector<8x32xf32> to vector<8x8xf32>
    %111 = vector.extract_strided_slice %107 {offsets = [0, 24], sizes = [8, 8], strides = [1, 1]} : vector<8x32xf32> to vector<8x8xf32>
    %112 = vector.shape_cast %108 : vector<8x8xf32> to vector<1x8x8xf32>
    %113 = vector.shape_cast %109 : vector<8x8xf32> to vector<1x8x8xf32>
    %114 = vector.shape_cast %110 : vector<8x8xf32> to vector<1x8x8xf32>
    %115 = vector.shape_cast %111 : vector<8x8xf32> to vector<1x8x8xf32>
    %116 = tpu.concatenate %112, %113, %114, %115 in 0 : vector<1x8x8xf32>, vector<1x8x8xf32>, vector<1x8x8xf32>, vector<1x8x8xf32> -> vector<4x8x8xf32>
    %117 = arith.truncf %116 : vector<4x8x8xf32> to vector<4x8x8xbf16>
    "tpu.trace_start"() <{level = 10 : i32, message = "hqd,hkd->hqk"}> : () -> ()
    %cst_22 = arith.constant dense<0.000000e+00> : vector<4x8x8xf32>
    %118 = tpu.matmul %95, %106, %cst_22 {dimension_numbers = #tpu.dot_dimension_numbers<[2], [2], [1], [1], [0, 0, 0, 1, 1, 1], [0], [0]>} : vector<4x8x8xbf16>, vector<4x8x8xbf16>, vector<4x8x8xf32> -> vector<4x8x8xf32>
    "tpu.trace_stop"() : () -> ()
    %119 = vector.shape_cast %24 : vector<8x8xi1> to vector<1x8x8xi1>
    %cst_23 = arith.constant 0xFF800000 : f32
    %120 = vector.shape_cast %119 : vector<1x8x8xi1> to vector<1x8x8xi1>
    %121 = vector.broadcast %120 : vector<1x8x8xi1> to vector<4x8x8xi1>
    %122 = vector.broadcast %cst_23 : f32 to vector<4x8x8xf32>
    %123 = arith.select %121, %118, %122 : vector<4x8x8xi1>, vector<4x8x8xf32>
    %cst_24 = arith.constant dense<0xFF800000> : vector<4x8xf32>
    %124 = vector.multi_reduction <maximumf>, %123, %cst_24 [2] : vector<4x8x8xf32> to vector<4x8xf32>
    %125 = vector.shape_cast %124 : vector<4x8xf32> to vector<4x8x1xf32>
    %126 = vector.broadcast %125 : vector<4x8x1xf32> to vector<4x8x8xf32>
    %127 = arith.subf %123, %126 : vector<4x8x8xf32>
    %128 = math.exp %127 : vector<4x8x8xf32>
    %cst_25 = arith.constant dense<0.000000e+00> : vector<4x8xf32>
    %129 = vector.multi_reduction <add>, %128, %cst_25 [2] : vector<4x8x8xf32> to vector<4x8xf32>
    %130 = vector.shape_cast %129 : vector<4x8xf32> to vector<4x8x1xf32>
    %131 = tpu.reciprocal %130 {approx = true} : vector<4x8x1xf32> -> vector<4x8x1xf32>
    %132 = vector.broadcast %131 : vector<4x8x1xf32> to vector<4x8x8xf32>
    %133 = arith.mulf %128, %132 : vector<4x8x8xf32>
    %134 = arith.truncf %133 : vector<4x8x8xf32> to vector<4x8x8xbf16>
    "tpu.trace_start"() <{level = 10 : i32, message = "hqk,hkd->hqd"}> : () -> ()
    %cst_26 = arith.constant dense<0.000000e+00> : vector<4x8x8xf32>
    %135 = tpu.matmul %134, %117, %cst_26 {dimension_numbers = #tpu.dot_dimension_numbers<[2], [1], [1], [2], [0, 0, 0, 1, 1, 2], [0], [0]>} : vector<4x8x8xbf16>, vector<4x8x8xbf16>, vector<4x8x8xf32> -> vector<4x8x8xf32>
    "tpu.trace_stop"() : () -> ()
    %136 = vector.extract_strided_slice %135 {offsets = [0, 0, 0], sizes = [1, 8, 8], strides = [1, 1, 1]} : vector<4x8x8xf32> to vector<1x8x8xf32>
    %137 = vector.shape_cast %136 : vector<1x8x8xf32> to vector<8x8xf32>
    %138 = vector.extract_strided_slice %135 {offsets = [1, 0, 0], sizes = [1, 8, 8], strides = [1, 1, 1]} : vector<4x8x8xf32> to vector<1x8x8xf32>
    %139 = vector.shape_cast %138 : vector<1x8x8xf32> to vector<8x8xf32>
    %140 = vector.extract_strided_slice %135 {offsets = [2, 0, 0], sizes = [1, 8, 8], strides = [1, 1, 1]} : vector<4x8x8xf32> to vector<1x8x8xf32>
    %141 = vector.shape_cast %140 : vector<1x8x8xf32> to vector<8x8xf32>
    %142 = vector.extract_strided_slice %135 {offsets = [3, 0, 0], sizes = [1, 8, 8], strides = [1, 1, 1]} : vector<4x8x8xf32> to vector<1x8x8xf32>
    %143 = vector.shape_cast %142 : vector<1x8x8xf32> to vector<8x8xf32>
    %144 = tpu.concatenate %137, %139, %141, %143 in 1 : vector<8x8xf32>, vector<8x8xf32>, vector<8x8xf32>, vector<8x8xf32> -> vector<8x32xf32>
    %145 = tpu.concatenate %84, %144 in 0 : vector<8x32xf32>, vector<8x32xf32> -> vector<16x32xf32>
    %146 = arith.truncf %145 : vector<16x32xf32> to vector<16x32xbf16>
    %c0_27 = arith.constant 0 : index
    %c0_28 = arith.constant 0 : index
    %147 = vector.load %arg9[%c0_27, %c0_28] : memref<32x32xbf16, #tpu.memory_space<vmem>>, vector<32x32xbf16>
    %cst_29 = arith.constant dense<0.000000e+00> : vector<16x32xf32>
    %148 = tpu.matmul %146, %147, %cst_29 {dimension_numbers = #tpu.dot_dimension_numbers<[1], [0], [0], [1], [0, 0, 1, 1], [], []>} : vector<16x32xbf16>, vector<32x32xbf16>, vector<16x32xf32> -> vector<16x32xf32>
    %c0_30 = arith.constant 0 : index
    %c0_31 = arith.constant 0 : index
    %149 = vector.load %arg10[%c0_30, %c0_31] : memref<1x32xf32, #tpu.memory_space<vmem>>, vector<1x32xf32>
    %150 = vector.broadcast %149 : vector<1x32xf32> to vector<16x32xf32>
    %151 = arith.addf %148, %150 : vector<16x32xf32>
    %152 = vector.shape_cast %151 : vector<16x32xf32> to vector<2x8x32xf32>
    %c0_32 = arith.constant 0 : index
    %c0_33 = arith.constant 0 : index
    %c0_34 = arith.constant 0 : index
    %153 = vector.load %arg11[%c0_32, %c0_33, %c0_34] : memref<2x8x32xf32, #tpu.memory_space<vmem>>, vector<2x8x32xf32>
    tpu.vector_store %arg11[%c0_32, %c0_33, %c0_34], %152 {strides = array<i32>} : memref<2x8x32xf32, #tpu.memory_space<vmem>>, vector<2x8x32xf32>,
    return
  }
  func.func @transform_0(%arg0: i32, %arg1: memref<1xi32, #tpu.memory_space<smem>>) -> (i32, i32, i32) {
    %c0_i32 = arith.constant 0 : i32
    %c0_i32_0 = arith.constant 0 : i32
    %c0_i32_1 = arith.constant 0 : i32
    return %arg0, %c0_i32, %c0_i32_0 : i32, i32, i32
  }
  func.func @transform_1(%arg0: i32, %arg1: memref<1xi32, #tpu.memory_space<smem>>) -> (i32, i32) {
    %c0_i32 = arith.constant 0 : i32
    %c0_i32_0 = arith.constant 0 : i32
    %c0_i32_1 = arith.constant 0 : i32
    return %c0_i32, %c0_i32_0 : i32, i32
  }
  func.func @transform_2(%arg0: i32, %arg1: memref<1xi32, #tpu.memory_space<smem>>) -> (i32, i32) {
    %c0_i32 = arith.constant 0 : i32
    %c0_i32_0 = arith.constant 0 : i32
    %c0_i32_1 = arith.constant 0 : i32
    return %c0_i32, %c0_i32_0 : i32, i32
  }
  func.func @transform_3(%arg0: i32, %arg1: memref<1xi32, #tpu.memory_space<smem>>) -> (i32, i32) {
    %c0_i32 = arith.constant 0 : i32
    %c0_i32_0 = arith.constant 0 : i32
    %c0_i32_1 = arith.constant 0 : i32
    return %c0_i32, %c0_i32_0 : i32, i32
  }
  func.func @transform_4(%arg0: i32, %arg1: memref<1xi32, #tpu.memory_space<smem>>) -> (i32, i32) {
    %c0_i32 = arith.constant 0 : i32
    %c0_i32_0 = arith.constant 0 : i32
    %c0_i32_1 = arith.constant 0 : i32
    return %c0_i32, %c0_i32_0 : i32, i32
  }
  func.func @transform_5(%arg0: i32, %arg1: memref<1xi32, #tpu.memory_space<smem>>) -> (i32, i32) {
    %c0_i32 = arith.constant 0 : i32
    %c0_i32_0 = arith.constant 0 : i32
    %c0_i32_1 = arith.constant 0 : i32
    return %c0_i32, %c0_i32_0 : i32, i32
  }
  func.func @transform_6(%arg0: i32, %arg1: memref<1xi32, #tpu.memory_space<smem>>) -> (i32, i32) {
    %c0_i32 = arith.constant 0 : i32
    %c0_i32_0 = arith.constant 0 : i32
    %c0_i32_1 = arith.constant 0 : i32
    return %c0_i32, %c0_i32_0 : i32, i32
  }
  func.func @transform_7(%arg0: i32, %arg1: memref<1xi32, #tpu.memory_space<smem>>) -> (i32, i32) {
    %c0_i32 = arith.constant 0 : i32
    %c0_i32_0 = arith.constant 0 : i32
    %c0_i32_1 = arith.constant 0 : i32
    return %c0_i32, %c0_i32_0 : i32, i32
  }
  func.func @transform_8(%arg0: i32, %arg1: memref<1xi32, #tpu.memory_space<smem>>) -> (i32, i32) {
    %c0_i32 = arith.constant 0 : i32
    %c0_i32_0 = arith.constant 0 : i32
    %c0_i32_1 = arith.constant 0 : i32
    return %c0_i32, %c0_i32_0 : i32, i32
  }
  func.func @transform_9(%arg0: i32, %arg1: memref<1xi32, #tpu.memory_space<smem>>) -> (i32, i32, i32) {
    %c0_i32 = arith.constant 0 : i32
    %c0_i32_0 = arith.constant 0 : i32
    %c0_i32_1 = arith.constant 0 : i32
    return %arg0, %c0_i32, %c0_i32_0 : i32, i32, i32
  }
}

</mosaic_0001>

<bundles_post_ra>
// kernel: tpu_custom_call.1
= control target key start
LH: loop header
LB: loop body
LE: loop exit
PB: predicated region body
PF: predicated region fallthrough
CT: control target
= control target key end

     0   :  { %16 = vsyncpa [#allocation5], 0  ;;  %s2090_s0 = inlined_call_operand.<no memory space> [shape: s32[1], index: 0, kind: input, shape index: {}]   ;;  %s2091_s1 = inlined_call_operand.hbm [shape: f32[2,8,32], index: 1, kind: input, shape index: {}]   ;;  %s2092_s2 = inlined_call_operand.hbm [shape: bf16[32,32], index: 2, kind: input, shape index: {}]   ;;  %s2093_s3 = inlined_call_operand.vmem [shape: f32[1,32], index: 3, kind: input, shape index: {}]   ;;  %s2094_s4 = inlined_call_operand.hbm [shape: bf16[32,32], index: 4, kind: input, shape index: {}]   ;;  %s2095_s5 = inlined_call_operand.vmem [shape: f32[1,32], index: 5, kind: input, shape index: {}]   ;;  %s2096_s6 = inlined_call_operand.hbm [shape: bf16[32,32], index: 6, kind: input, shape index: {}]   ;;  %s2097_s7 = inlined_call_operand.vmem [shape: f32[1,32], index: 7, kind: input, shape index: {}]   ;;  %s2098_s8 = inlined_call_operand.hbm [shape: bf16[32,32], index: 8, kind: input, shape index: {}]   ;;  %s2099_s9 = inlined_call_operand.vmem [shape: f32[1,32], index: 9, kind: input, shape index: {}]   ;;  %s2100_s10 = inlined_call_operand.hbm [shape: f32[2,8,32], index: 10, kind: output, shape index: {}]  }
   0x1   :  { %17 = vsyncpa [#allocation8], 0 }
   0x2   :  { %18 = vsyncpa [#allocation11], 0 }
   0x3   :  { %19 = vsyncpa [#allocation6], 0  ;;  %s1768_s13 = smov [#allocation7]  }
   0x4   :  { %s37_s14 = sshll.u32 %s1768_s13, 4  ;;  %s38_s14 = int_to_ptr.vmem [resolvable:$true] %s37_s14 }
   0x5   :  { %s1648_s15 = scalar_lea.vmem %s38_s14, 256  ;;  %p1653_p1 = scmp.lt.s32.totalorder %s38_s14, %s38_s14 }
   0x6   :  { %p1649_p0 = scmp.ne.s32.totalorder %s38_s14, %s1648_s15  ;;  %p1654_p2 = scmp.lt.s32.totalorder %s1648_s15, %s1648_s15 }
   0x8   :  { %p1655_p3 = por %p1654_p2, %p1653_p1 }
   0xa   :  { %p1656_p4 = pnand %p1655_p3, %p1649_p0 }
   0xc   :  { %1659 = shalt.err (!%p1656_p4)
}
   0xd   :  { %s1769_s16 = smov 64   ;;  %s1770_s17 = smov 4  }
   0xe   :  { %43 = dma.hbm_to_vmem [thread:$0]  %s2092_s2, 256, %s38_s14, [#allocation8], %s1769_s16, %s1769_s16, %s1770_s17  }
   0xf   :  { %s1771_s20 = smov [#allocation10]   ;;  %s1772_s22 = smov [#allocation4]  }
  0x10   :  { %s65_s21 = sshll.u32 %s1771_s20, 4  ;;  %s25_s23 = sshll.u32 %s1772_s22, 4  ;;  %s66_s21 = int_to_ptr.vmem [resolvable:$true] %s65_s21  ;;  %s26_s23 = int_to_ptr.vmem [resolvable:$true] %s25_s23 }
  0x11   :  { %s1668_s24 = scalar_lea.vmem %s66_s21, 256  ;;  %p1673_p6 = scmp.lt.s32.totalorder %s66_s21, %s66_s21 }
  0x12   :  { %p1669_p5 = scmp.ne.s32.totalorder %s66_s21, %s1668_s24  ;;  %p1674_p7 = scmp.lt.s32.totalorder %s1668_s24, %s1668_s24 }
  0x14   :  { %p1675_p8 = por %p1674_p7, %p1673_p6 }
  0x16   :  { %p1676_p9 = pnand %p1675_p8, %p1669_p5 }
  0x18   :  { %1679 = shalt.err (!%p1676_p9)
}
  0x19   :  { %71 = dma.hbm_to_vmem [thread:$0]  %s2096_s6, 256, %s66_s21, [#allocation11], %s1769_s16, %s1769_s16, %s1770_s17  }
  0x1a   :  { %s1688_s2 = scalar_lea.vmem %s26_s23, 256  ;;  %p1693_p11 = scmp.lt.s32.totalorder %s26_s23, %s26_s23 }
  0x1b   :  { %p1689_p10 = scmp.ne.s32.totalorder %s26_s23, %s1688_s2  ;;  %p1694_p12 = scmp.lt.s32.totalorder %s1688_s2, %s1688_s2 }
  0x1d   :  { %p1695_p13 = por %p1694_p12, %p1693_p11 }
  0x1f   :  { %p1696_p0 = pnand %p1695_p13, %p1689_p10 }
  0x21   :  { %1699 = shalt.err (!%p1696_p0)
}
  0x22   :  { %s1773_s27 = smov 128   ;;  %s1774_s28 = smov 8  }
  0x23   :  { %31 = dma.hbm_to_vmem [thread:$0]  %s2091_s1, 256, %s26_s23, [#allocation5], %s1773_s27, %s1773_s27, %s1774_s28  }
  0x24   :  { %s1775_s11 = smov [#allocation9]   ;;  %s1776_s6 = smov [#allocation12]  }
  0x25   :  { %s51_s12 = sshll.u32 %s1775_s11, 4  ;;  %s79_s13 = sshll.u32 %s1776_s6, 4  ;;  %s52_s12 = int_to_ptr.vmem [resolvable:$true] %s51_s12  ;;  %s80_s13 = int_to_ptr.vmem [resolvable:$true] %s79_s13 }
  0x26   :  { %s1708_s14 = scalar_lea.vmem %s52_s12, 256  ;;  %p1713_p2 = scmp.lt.s32.totalorder %s52_s12, %s52_s12 }
  0x27   :  { %p1709_p1 = scmp.ne.s32.totalorder %s52_s12, %s1708_s14  ;;  %p1714_p3 = scmp.lt.s32.totalorder %s1708_s14, %s1708_s14 }
  0x29   :  { %p1715_p4 = por %p1714_p3, %p1713_p2 }
  0x2b   :  { %p1716_p5 = pnand %p1715_p4, %p1709_p1 }
  0x2d   :  { %1719 = shalt.err (!%p1716_p5)
}
  0x2e   :  { %57 = dma.hbm_to_vmem [thread:$0]  %s2094_s4, 256, %s52_s12, [#allocation8], %s1769_s16, %s1769_s16, %s1770_s17  }
  0x2f   :  { %s1728_s1 = scalar_lea.vmem %s80_s13, 256  ;;  %p1733_p7 = scmp.lt.s32.totalorder %s80_s13, %s80_s13 }
  0x30   :  { %p1729_p6 = scmp.ne.s32.totalorder %s80_s13, %s1728_s1  ;;  %p1734_p8 = scmp.lt.s32.totalorder %s1728_s1, %s1728_s1 }
  0x32   :  { %p1735_p9 = por %p1734_p8, %p1733_p7 }
  0x34   :  { %p1736_p10 = pnand %p1735_p9, %p1729_p6 }
  0x36   :  { %1739 = shalt.err (!%p1736_p10)
}
  0x37   :  { %85 = dma.hbm_to_vmem [thread:$0]  %s2098_s8, 256, %s80_s13, [#allocation11], %s1769_s16, %s1769_s16, %s1770_s17  }
  0x38   :  { %1760 = dma.done.wait [#allocation5], 256  }
  0x39   :  { %1761 = vsyncadd [#allocation5], 4294967040 }
  0x3a   :  { %1762 = dma.done.wait [#allocation8], 512  }
  0x3b   :  { %1763 = vsyncadd [#allocation8], 4294966784 }
  0x3c   :  { %1764 = dma.done.wait [#allocation11], 512  }
  0x3d   :  { %1765 = vsyncadd [#allocation11], 4294966784  ;;  %v1777_v0 = vmov 0.0   ;;  %vm1778_vm0 = vmmov 0   ;;  %v1600_v1 = vld [vmem:[#allocation7 + $0x8] sm:$0xff]   ;;  %v1601_v2 = vld [vmem:[#allocation9 + $0x8] sm:$0xff]   ;;  %v304_v51 = vlaneseq  ;;  %v312_v57 = vstv %s2090_s0 }
  0x3e   :  { %1440 = vmatprep.subr.bf16.mxu0 %v1777_v0  ;;  %1448 = vmatprep.subr.bf16.mxu1 %v1777_v0  ;;  %v1602_v3 = vld [vmem:[#allocation7] sm:$0xff]   ;;  %v1603_v4 = vld [vmem:[#allocation9] sm:$0xff]   ;;  %v105_v6 = vld [vmem:[#allocation4 + $0x8] sm:$0xff]  ;;  %vm130_vm1 = vcmask 261120   ;;  %s1779_s21 = smov 120   ;;  %vm356_vm2 = vcmask 64512  }
  0x3f   :  { %1444 = vmatprep.mubr.msk.bf16.mxu0 %vm1778_vm0, %v1777_v0  ;;  %1452 = vmatprep.mubr.msk.bf16.mxu1 %vm1778_vm0, %v1777_v0  ;;  %v104_v5 = vld [vmem:[#allocation4] sm:$0xff]  ;;  %v1604_v8 = vld [vmem:[#allocation10 + $0x8] sm:$0xff]   ;;  %v1605_v9 = vld [vmem:[#allocation10] sm:$0xff]   ;;  %vm598_vm3 = vcmask 1043456   ;;  %v305_v52 = vshrl.u32 %v304_v51, 7  ;;  %v307_v53 = vand.u32 127, %v304_v51 }
  0x40   :  { %1441 = vmatpush3.bf16.msra.mxu0 %v1600_v1  ;;  %1449 = vmatpush3.bf16.msra.mxu1 %v1601_v2  ;;  %v106_v7 = vpack.c.bf16 %v105_v6, %v104_v5  ;;  %v1363_v10 = vld [vmem:[%s2093_s3] ss:$0 sm:$0xff]  ;;  %s1780_s3 = smov 104   ;;  %s1782_s0 = smov 16   ;;  %vm793_vm5 = vcmask 130048   ;;  %vm795_vm6 = vcmask 195584  }
  0x41   :  { %1442 = vmatprep.subr.bf16.mxu0 %v1777_v0  ;;  %1450 = vmatprep.subr.bf16.mxu1 %v1777_v0  ;;  %v1367_v11 = vld [vmem:[%s2095_s5] ss:$0 sm:$0xff]  ;;  %s1781_s5 = smov 112   ;;  %v308_v54 = vsub.s32 %v305_v52, %v307_v53  ;;  %s1783_s25 = smov 24  }
  0x42   :  { %v1371_v28 = vld [vmem:[%s2097_s7] ss:$0 sm:$0xff]  ;;  %s1784_s29 = smov [#allocation13]  }
  0x43   :  { %v310_v55 = vsub.s32 0, %v308_v54  ;;  %s1349_s30 = sshll.u32 %s1784_s29, 4  ;;  %s1350_s30 = int_to_ptr.vmem [resolvable:$true] %s1349_s30 }
  0x44   :  { %1443 = vmatpush3.bf16.msra.mxu0 %v1602_v3  ;;  %1451 = vmatpush3.bf16.msra.mxu1 %v1603_v4  ;;  %s1740_s11 = scalar_lea.vmem %s1350_s30, 256  ;;  %p1745_p12 = scmp.lt.s32.totalorder %s1350_s30, %s1350_s30 }
  0x45   :  { %1456 = vmatprep.subr.bf16.mxu0 %v1777_v0  ;;  %1464 = vmatprep.subr.bf16.mxu1 %v1777_v0  ;;  %v1375_v56 = vmin.u32 %v310_v55, %v308_v54  ;;  %p1741_p11 = scmp.ne.s32.totalorder %s1350_s30, %s1740_s11  ;;  %p1746_p13 = scmp.lt.s32.totalorder %s1740_s11, %s1740_s11 }
  0x47   :  { %1445 = vmatmul.mubr.msk.bf16.vlgmr.msra.gmra.mxu0 %vm130_vm1, %v106_v7  ;;  %1453 = vmatmul.mubr.msk.bf16.vlgmr.msra.gmra.mxu1 %vm130_vm1, %v106_v7  ;;  %vm1941_vm4 = vcmp.le.s32.totalorder %v1375_v56, %v312_v57  ;;  %p1747_p0 = por %p1746_p13, %p1745_p12 }
  0x48   :  { %1460 = vmatprep.mubr.msk.bf16.mxu0 %vm1778_vm0, %v1777_v0  ;;  %1466 = vmatprep.mubr.msk.bf16.mxu1 %vm1778_vm0, %v1777_v0 }
  0x49   :  { %1457 = vmatpush3.bf16.msra.mxu0 %v1604_v8  ;;  %p1748_p1 = pnand %p1747_p0, %p1741_p11 }
  0x4a   :  { %1458 = vmatprep.subr.bf16.mxu0 %v1777_v0 }
  0x4d   :  { %1459 = vmatpush3.bf16.msra.mxu0 %v1605_v9 }
  0x4e   :  { %1470 = vmatprep.subr.bf16.mxu0 %v1777_v0 }
  0x50   :  { %1461 = vmatmul.mubr.msk.bf16.vlgmr.msra.gmra.mxu0 %vm130_vm1, %v106_v7 }
  0x51   :  { %1472 = vmatprep.mubr.msk.bf16.mxu0 %vm1778_vm0, %v1777_v0 }
 0x107   :  { %v168_v12 = vpop.f32.mrf.mxu0  ;;  %v232_v14 = vpop.f32.mrf.mxu1 }
 0x108   :  { %v169_v13 = vadd.f32 %v1363_v10, %v168_v12  ;;  %v233_v15 = vadd.f32 %v1367_v11, %v232_v14 }
 0x109   :  { %v1446_v16 = vpop.f32.mrf.mxu0  ;;  %v1454_v17 = vpop.f32.mrf.mxu1 }
 0x10a   :  { %315 = vrot.lane.b32.xlu1 %v169_v13, %s1779_s21  ;;  %329 = vrot.lane.b32.xlu0 %v233_v15, %s1779_s21  ;;  %v338_v19 = vpack.c.bf16 %v233_v15, %v233_v15  ;;  %v324_v26 = vpack.c.bf16 %v169_v13, %v169_v13 }
 0x10b   :  { %v171_v18 = vpop.f32.mrf.mxu0  ;;  %v235_v21 = vpop.f32.mrf.mxu1 }
 0x10c   :  { %v1899_v20 = vadd.f32 %v1363_v10, %v171_v18  ;;  %v1901_v22 = vadd.f32 %v1367_v11, %v235_v21  ;;  %v361_v24 = vsel %vm356_vm2, %v338_v19, 0 }
 0x10d   :  { %v1447_v23 = vpop.f32.mrf.mxu0  ;;  %v1455_v25 = vpop.f32.mrf.mxu1  ;;  %1465 = vmatpush3.bf16.xpose.msra.mxu1 %v361_v24 }
 0x10e   :  { %335 = vrot.lane.b32.xlu1 %v233_v15, %s1780_s3  ;;  %332 = vrot.lane.b32.xlu0 %v233_v15, %s1781_s5 }
 0x10f   :  { %1476 = vmatprep.subr.bf16.mxu1 %v1777_v0 }
 0x110   :  { %v296_v27 = vpop.f32.mrf.mxu0 }
 0x111   :  { %v1919_v40 = vadd.f32 %v1371_v28, %v296_v27 }
 0x112   :  { %321 = vrot.lane.b32.xlu1 %v169_v13, %s1780_s3  ;;  %318 = vrot.lane.b32.xlu0 %v169_v13, %s1781_s5  ;;  %v1462_v29 = vpop.f32.mrf.mxu0 }
 0x113   :  { %v352_v44 = vpack.c.bf16 %v1919_v40, %v1919_v40 }
 0x114   :  { %1467 = vmatmul.mubr.msk.bf16.vlgmr.msra.gmra.mxu1 %vm356_vm2, %v324_v26  ;;  %v299_v30 = vpop.f32.mrf.mxu0 }
 0x115   :  { %1478 = vmatprep.mubr.msk.bf16.mxu1 %vm1778_vm0, %v1777_v0  ;;  %v1915_v31 = vadd.f32 %v1371_v28, %v299_v30  ;;  %v600_v48 = vsel %vm598_vm3, %v352_v44, 0 }
 0x116   :  { %v1463_v32 = vpop.f32.mrf.mxu0 }
 0x17c   :  { %v316_v33 = vpop.permute.xlu1 %315  ;;  %v330_v34 = vpop.permute.xlu0 %329 }
 0x17d   :  { %v339_v35 = vpack.c.bf16 %v330_v34, %v330_v34  ;;  %v325_v43 = vpack.c.bf16 %v316_v33, %v316_v33 }
 0x17f   :  { %v407_v36 = vsel %vm356_vm2, %v339_v35, 0 }
 0x180   :  { %v333_v37 = vpop.permute.xlu0 %332  ;;  %1471 = vmatpush3.bf16.xpose.msra.mxu0 %v407_v36  ;;  %v336_v38 = vpop.permute.xlu1 %335 }
 0x181   :  { %v340_v39 = vpack.c.bf16 %v333_v37, %v333_v37  ;;  %1482 = vmatprep.subr.bf16.mxu0 %v1777_v0  ;;  %v341_v42 = vpack.c.bf16 %v336_v38, %v336_v38 }
 0x183   :  { %v453_v41 = vsel %vm356_vm2, %v340_v39, 0  ;;  %v499_v46 = vsel %vm356_vm2, %v341_v42, 0 }
 0x184   :  { %1477 = vmatpush3.bf16.xpose.msra.mxu1 %v453_v41  ;;  %v319_v45 = vpop.permute.xlu0 %318  ;;  %v322_v49 = vpop.permute.xlu1 %321 }
 0x185   :  { %1488 = vmatprep.subr.bf16.mxu1 %v1777_v0  ;;  %v326_v47 = vpack.c.bf16 %v319_v45, %v319_v45  ;;  %v327_v50 = vpack.c.bf16 %v322_v49, %v322_v49 }
 0x187   :  { %1473 = vmatmul.mubr.msk.bf16.vlgmr.msra.gmra.mxu0 %vm356_vm2, %v325_v43 }
 0x188   :  { %1483 = vmatpush3.bf16.xpose.msra.mxu0 %v499_v46  ;;  %1484 = vmatprep.mubr.msk.bf16.mxu0 %vm1778_vm0, %v1777_v0 }
 0x189   :  { %1494 = vmatprep.subr.bf16.mxu0 %v1777_v0 }
 0x18b   :  { %1479 = vmatmul.mubr.msk.bf16.vlgmr.msra.gmra.mxu1 %vm356_vm2, %v326_v47 }
 0x18c   :  { %1489 = vmatpush3.bf16.msra.mxu1 %v600_v48  ;;  %1490 = vmatprep.mubr.msk.bf16.mxu1 %vm1778_vm0, %v1777_v0 }
 0x18d   :  { %1500 = vmatprep.subr.bf16.mxu1 %v1777_v0 }
 0x18f   :  { %1485 = vmatmul.mubr.msk.bf16.vlgmr.msra.gmra.mxu0 %vm356_vm2, %v327_v50 }
 0x190   :  { %1496 = vmatprep.mubr.msk.bf16.mxu0 %vm1778_vm0, %v1777_v0 }
 0x1d4   :  { %v397_v59 = vpop.f32.mrf.mxu1 }
 0x1d5   :  { %v543_v60 = vsel %vm1941_vm4, %v397_v59, -inf }
 0x1d6   :  { %v1468_v61 = vpop.f32.mrf.mxu1  ;;  %v547_v62 = vsel %vm356_vm2, %v543_v60, -inf }
 0x1d7   :  { %548 = vmax.xlane.f32.xlu0 %v547_v62 }
 0x1d8   :  { %v400_v63 = vpop.f32.mrf.mxu1 }
 0x1da   :  { %v1469_v1 = vpop.f32.mrf.mxu1 }
 0x247   :  { %v443_v2 = vpop.f32.mrf.mxu0 }
 0x248   :  { %v544_v3 = vsel %vm1941_vm4, %v443_v2, -inf  ;;  %v821_v2 = vpack.c.bf16 %v1901_v22, %v1901_v22 }
 0x249   :  { %v1474_v4 = vpop.f32.mrf.mxu0  ;;  %v550_v5 = vsel %vm356_vm2, %v544_v3, -inf }
 0x24a   :  { %551 = vmax.xlane.f32.xlu1 %v550_v5 }
 0x24b   :  { %v446_v6 = vpop.f32.mrf.mxu0  ;;  %v489_v7 = vpop.f32.mrf.mxu1 }
 0x24c   :  { %v545_v8 = vsel %vm1941_vm4, %v489_v7, -inf }
 0x24d   :  { %v1475_v9 = vpop.f32.mrf.mxu0  ;;  %v1480_v10 = vpop.f32.mrf.mxu1  ;;  %v553_v11 = vsel %vm356_vm2, %v545_v8, -inf }
 0x24e   :  { %554 = vmax.xlane.f32.xlu0 %v553_v11 }
 0x24f   :  { %v492_v12 = vpop.f32.mrf.mxu1  ;;  %v535_v13 = vpop.f32.mrf.mxu0 }
 0x250   :  { %v546_v14 = vsel %vm1941_vm4, %v535_v13, -inf }
 0x251   :  { %v1481_v15 = vpop.f32.mrf.mxu1  ;;  %v1486_v16 = vpop.f32.mrf.mxu0  ;;  %v556_v17 = vsel %vm356_vm2, %v546_v14, -inf }
 0x252   :  { %557 = vmax.xlane.f32.xlu0 %v556_v17 }
 0x253   :  { %v538_v18 = vpop.f32.mrf.mxu0 }
 0x255   :  { %v1487_v19 = vpop.f32.mrf.mxu0 }
 0x25b   :  { %343 = vrot.lane.b32.xlu1 %v1919_v40, %s1779_s21 }
 0x260   :  { %v549_v21 = vpop.xlane.xlu0 %548 }
 0x261   :  { %v559_v23 = vsub.f32 %v543_v60, %v549_v21 }
 0x263   :  { %v563_v24 = vmul.f32 1.442695, %v559_v23 }
 0x265   :  { %1608 = vpow2.f32 %v563_v24 }
 0x272   :  { %v1609_v25 = vpop.eup %1608 }
 0x273   :  { %v571_v26 = vsel %vm356_vm2, %v1609_v25, 0.0 }
 0x27f   :  { %572 = vadd.xlane.f32.xlu1 %v571_v26 }
 0x2d3   :  { %v552_v27 = vpop.xlane.xlu1 %551 }
 0x2d4   :  { %v560_v28 = vsub.f32 %v544_v3, %v552_v27 }
 0x2d6   :  { %v565_v29 = vmul.f32 1.442695, %v560_v28 }
 0x2d7   :  { %v555_v30 = vpop.xlane.xlu0 %554  ;;  %v344_v32 = vpop.permute.xlu1 %343 }
 0x2d8   :  { %1610 = vpow2.f32 %v565_v29  ;;  %v561_v33 = vsub.f32 %v545_v8, %v555_v30  ;;  %v353_v34 = vpack.c.bf16 %v344_v32, %v344_v32  ;;  %v843_v8 = vsel %vm356_vm2, %v821_v2, 0 }
 0x2da   :  { %v567_v35 = vmul.f32 1.442695, %v561_v33  ;;  %v646_v36 = vsel %vm598_vm3, %v353_v34, 0 }
 0x2db   :  { %1495 = vmatpush3.bf16.msra.mxu0 %v646_v36  ;;  %v558_v37 = vpop.xlane.xlu0 %557 }
 0x2dc   :  { %1612 = vpow2.f32 %v567_v35  ;;  %v562_v38 = vsub.f32 %v546_v14, %v558_v37  ;;  %1506 = vmatprep.subr.bf16.mxu0 %v1777_v0  ;;  %v807_v14 = vpack.c.bf16 %v1899_v20, %v1899_v20 }
 0x2de   :  { %v569_v39 = vmul.f32 1.442695, %v562_v38 }
 0x2e0   :  { %1614 = vpow2.f32 %v569_v39 }
 0x2e5   :  { %v1611_v41 = vpop.eup %1610 }
 0x2e6   :  { %v574_v42 = vsel %vm356_vm2, %v1611_v41, 0.0 }
 0x2e7   :  { %575 = vadd.xlane.f32.xlu0 %v574_v42 }
 0x2e9   :  { %v1613_v43 = vpop.eup %1612 }
 0x2ea   :  { %v577_v44 = vsel %vm356_vm2, %v1613_v43, 0.0 }
 0x2eb   :  { %578 = vadd.xlane.f32.xlu1 %v577_v44 }
 0x2ed   :  { %v1615_v45 = vpop.eup %1614 }
 0x2ee   :  { %v580_v46 = vsel %vm356_vm2, %v1615_v45, 0.0 }
 0x2ef   :  { %581 = vadd.xlane.f32.xlu0 %v580_v46 }
 0x2fc   :  { %349 = vrot.lane.b32.xlu1 %v1919_v40, %s1780_s3 }
 0x300   :  { %812 = vrot.lane.b32.xlu1 %v1901_v22, %s1779_s21 }
 0x304   :  { %798 = vrot.lane.b32.xlu1 %v1899_v20, %s1779_s21 }
 0x305   :  { %346 = vrot.lane.b32.xlu0 %v1919_v40, %s1781_s5 }
 0x308   :  { %801 = vrot.lane.b32.xlu1 %v1899_v20, %s1781_s5  ;;  %v573_v47 = vpop.xlane.xlu1 %572 }
 0x309   :  { %1616 = vrcp.f32 %v573_v47  ;;  %815 = vrot.lane.b32.xlu0 %v1901_v22, %s1781_s5 }
 0x30d   :  { %818 = vrot.lane.b32.xlu0 %v1901_v22, %s1780_s3 }
 0x311   :  { %804 = vrot.lane.b32.xlu0 %v1899_v20, %s1780_s3  ;;  %v835_v20 = vpack.c.bf16 %v1915_v31, %v1915_v31 }
 0x313   :  { %v1079_v24 = vsel %vm598_vm3, %v835_v20, 0 }
 0x316   :  { %v1617_v48 = vpop.eup %1616 }
 0x317   :  { %v587_v49 = vmul.f32 %v1617_v48, %v1609_v25 }
 0x319   :  { %v591_v50 = vpack.c.bf16 %v587_v49, %v587_v49 }
 0x31b   :  { %1491 = vmatmul.mubr.msk.bf16.vlgmr.msra.gmra.mxu1 %vm356_vm2, %v591_v50 }
 0x31c   :  { %1502 = vmatprep.mubr.msk.bf16.mxu1 %vm1778_vm0, %v1777_v0 }
 0x370   :  { %v576_v40 = vpop.xlane.xlu0 %575 }
 0x371   :  { %1618 = vrcp.f32 %v576_v40 }
 0x374   :  { %v579_v51 = vpop.xlane.xlu1 %578 }
 0x375   :  { %1620 = vrcp.f32 %v579_v51 }
 0x378   :  { %v582_v52 = vpop.xlane.xlu0 %581  ;;  %v350_v53 = vpop.permute.xlu1 %349 }
 0x379   :  { %1622 = vrcp.f32 %v582_v52  ;;  %v355_v57 = vpack.c.bf16 %v350_v53, %v350_v53 }
 0x37b   :  { %v738_v63 = vsel %vm598_vm3, %v355_v57, 0 }
 0x37c   :  { %v347_v54 = vpop.permute.xlu0 %346  ;;  %v813_v3 = vpop.permute.xlu1 %812 }
 0x37d   :  { %v354_v55 = vpack.c.bf16 %v347_v54, %v347_v54  ;;  %v822_v7 = vpack.c.bf16 %v813_v3, %v813_v3 }
 0x37e   :  { %v1619_v56 = vpop.eup %1618 }
 0x37f   :  { %v692_v59 = vsel %vm598_vm3, %v354_v55, 0  ;;  %v588_v60 = vmul.f32 %v1619_v56, %v1611_v41  ;;  %v889_v10 = vsel %vm356_vm2, %v822_v7, 0 }
 0x380   :  { %1501 = vmatpush3.bf16.msra.mxu1 %v692_v59  ;;  %v816_v6 = vpop.permute.xlu0 %815  ;;  %v799_v12 = vpop.permute.xlu1 %798 }
 0x381   :  { %v592_v61 = vpack.c.bf16 %v588_v60, %v588_v60  ;;  %1512 = vmatprep.subr.bf16.mxu1 %v1777_v0  ;;  %v823_v11 = vpack.c.bf16 %v816_v6, %v816_v6  ;;  %v808_v17 = vpack.c.bf16 %v799_v12, %v799_v12 }
 0x382   :  { %v1621_v62 = vpop.eup %1620 }
 0x383   :  { %1497 = vmatmul.mubr.msk.bf16.vlgmr.msra.gmra.mxu0 %vm356_vm2, %v592_v61  ;;  %v589_v1 = vmul.f32 %v1621_v62, %v1613_v43  ;;  %v935_v15 = vsel %vm356_vm2, %v823_v11, 0 }
 0x384   :  { %1507 = vmatpush3.bf16.msra.mxu0 %v738_v63  ;;  %1508 = vmatprep.mubr.msk.bf16.mxu0 %vm1778_vm0, %v1777_v0  ;;  %v819_v13 = vpop.permute.xlu0 %818  ;;  %v802_v18 = vpop.permute.xlu1 %801 }
 0x385   :  { %v593_v4 = vpack.c.bf16 %v589_v1, %v589_v1  ;;  %1518 = vmatprep.subr.bf16.mxu0 %v1777_v0  ;;  %v824_v16 = vpack.c.bf16 %v819_v13, %v819_v13  ;;  %v809_v21 = vpack.c.bf16 %v802_v18, %v802_v18 }
 0x386   :  { %v1623_v5 = vpop.eup %1622 }
 0x387   :  { %1503 = vmatmul.mubr.msk.bf16.vlgmr.msra.gmra.mxu1 %vm356_vm2, %v593_v4  ;;  %v590_v9 = vmul.f32 %v1623_v5, %v1615_v45  ;;  %v981_v19 = vsel %vm356_vm2, %v824_v16, 0 }
 0x388   :  { %1513 = vmatpush3.bf16.xpose.msra.mxu1 %v843_v8  ;;  %1514 = vmatprep.mubr.msk.bf16.mxu1 %vm1778_vm0, %v1777_v0  ;;  %v805_v23 = vpop.permute.xlu0 %804 }
 0x389   :  { %v594_v22 = vpack.c.bf16 %v590_v9, %v590_v9  ;;  %1524 = vmatprep.subr.bf16.mxu1 %v1777_v0  ;;  %v810_v25 = vpack.c.bf16 %v805_v23, %v805_v23 }
 0x38b   :  { %1509 = vmatmul.mubr.msk.bf16.vlgmr.msra.gmra.mxu0 %vm356_vm2, %v594_v22 }
 0x38c   :  { %1519 = vmatpush3.bf16.xpose.msra.mxu0 %v889_v10  ;;  %1520 = vmatprep.mubr.msk.bf16.mxu0 %vm1778_vm0, %v1777_v0 }
 0x38d   :  { %1530 = vmatprep.subr.bf16.mxu0 %v1777_v0 }
 0x38f   :  { %1515 = vmatmul.mubr.msk.bf16.vlgmr.msra.gmra.mxu1 %vm356_vm2, %v807_v14 }
 0x390   :  { %1525 = vmatpush3.bf16.xpose.msra.mxu1 %v935_v15  ;;  %1526 = vmatprep.mubr.msk.bf16.mxu1 %vm1778_vm0, %v1777_v0 }
 0x391   :  { %1536 = vmatprep.subr.bf16.mxu1 %v1777_v0 }
 0x393   :  { %1521 = vmatmul.mubr.msk.bf16.vlgmr.msra.gmra.mxu0 %vm356_vm2, %v808_v17 }
 0x394   :  { %1531 = vmatpush3.bf16.xpose.msra.mxu0 %v981_v19  ;;  %1532 = vmatprep.mubr.msk.bf16.mxu0 %vm1778_vm0, %v1777_v0 }
 0x395   :  { %1542 = vmatprep.subr.bf16.mxu0 %v1777_v0 }
 0x397   :  { %1527 = vmatmul.mubr.msk.bf16.vlgmr.msra.gmra.mxu1 %vm356_vm2, %v809_v21 }
 0x398   :  { %1537 = vmatpush3.bf16.msra.mxu1 %v1079_v24  ;;  %1538 = vmatprep.mubr.msk.bf16.mxu1 %vm1778_vm0, %v1777_v0 }
 0x399   :  { %1548 = vmatprep.subr.bf16.mxu1 %v1777_v0 }
 0x39b   :  { %1533 = vmatmul.mubr.msk.bf16.vlgmr.msra.gmra.mxu0 %vm356_vm2, %v810_v25 }
 0x39c   :  { %1544 = vmatprep.mubr.msk.bf16.mxu0 %vm1778_vm0, %v1777_v0 }
 0x3db   :  { %v2025_v26 = vpop.f32.mrf.mxu1 }
 0x3dd   :  { %v1492_v27 = vpop.f32.mrf.mxu1 }
 0x3df   :  { %v639_v28 = vpop.f32.mrf.mxu1 }
 0x3e1   :  { %v1493_v29 = vpop.f32.mrf.mxu1 }
 0x443   :  { %v2027_v30 = vpop.f32.mrf.mxu0 }
 0x445   :  { %v1498_v32 = vpop.f32.mrf.mxu0 }
 0x447   :  { %v685_v33 = vpop.f32.mrf.mxu0  ;;  %v2029_v34 = vpop.f32.mrf.mxu1 }
 0x449   :  { %v1499_v35 = vpop.f32.mrf.mxu0  ;;  %v1504_v36 = vpop.f32.mrf.mxu1 }
 0x44b   :  { %v731_v37 = vpop.f32.mrf.mxu1  ;;  %v2031_v38 = vpop.f32.mrf.mxu0 }
 0x44d   :  { %v1505_v39 = vpop.f32.mrf.mxu1  ;;  %v1510_v41 = vpop.f32.mrf.mxu0 }
 0x44f   :  { %v777_v42 = vpop.f32.mrf.mxu0  ;;  %v879_v43 = vpop.f32.mrf.mxu1 }
 0x450   :  { %v1023_v44 = vsel %vm1941_vm4, %v879_v43, -inf }
 0x451   :  { %v1511_v45 = vpop.f32.mrf.mxu0  ;;  %v1516_v46 = vpop.f32.mrf.mxu1  ;;  %v1027_v47 = vsel %vm356_vm2, %v1023_v44, -inf }
 0x452   :  { %1028 = vmax.xlane.f32.xlu1 %v1027_v47 }
 0x453   :  { %v882_v48 = vpop.f32.mrf.mxu1  ;;  %v925_v49 = vpop.f32.mrf.mxu0 }
 0x454   :  { %v1024_v50 = vsel %vm1941_vm4, %v925_v49, -inf }
 0x455   :  { %v1517_v40 = vpop.f32.mrf.mxu1  ;;  %v1522_v51 = vpop.f32.mrf.mxu0  ;;  %v1030_v52 = vsel %vm356_vm2, %v1024_v50, -inf }
 0x456   :  { %1031 = vmax.xlane.f32.xlu0 %v1030_v52 }
 0x457   :  { %v928_v53 = vpop.f32.mrf.mxu0  ;;  %v971_v54 = vpop.f32.mrf.mxu1 }
 0x458   :  { %v1025_v55 = vsel %vm1941_vm4, %v971_v54, -inf  ;;  %v1606_v54 = vld [vmem:[#allocation12 + $0x8] sm:$0xff]  }
 0x459   :  { %v1523_v56 = vpop.f32.mrf.mxu0  ;;  %v1528_v57 = vpop.f32.mrf.mxu1  ;;  %v1033_v59 = vsel %vm356_vm2, %v1025_v55, -inf }
 0x45a   :  { %1034 = vmax.xlane.f32.xlu0 %v1033_v59 }
 0x45b   :  { %v974_v60 = vpop.f32.mrf.mxu1  ;;  %v1017_v61 = vpop.f32.mrf.mxu0 }
 0x45c   :  { %v1026_v62 = vsel %vm1941_vm4, %v1017_v61, -inf }
 0x45d   :  { %v1529_v63 = vpop.f32.mrf.mxu1  ;;  %v1534_v1 = vpop.f32.mrf.mxu0  ;;  %v1036_v2 = vsel %vm356_vm2, %v1026_v62, -inf }
 0x45e   :  { %1037 = vmax.xlane.f32.xlu1 %v1036_v2 }
 0x45f   :  { %v1020_v3 = vpop.f32.mrf.mxu0 }
 0x461   :  { %v1535_v4 = vpop.f32.mrf.mxu0 }
 0x4db   :  { %v1029_v5 = vpop.xlane.xlu1 %1028 }
 0x4dc   :  { %v1039_v6 = vsub.f32 %v1023_v44, %v1029_v5 }
 0x4de   :  { %v1043_v7 = vmul.f32 1.442695, %v1039_v6  ;;  %v1607_v6 = vld [vmem:[#allocation12] sm:$0xff]  }
 0x4df   :  { %v1032_v8 = vpop.xlane.xlu0 %1031 }
 0x4e0   :  { %1624 = vpow2.f32 %v1043_v7  ;;  %v1040_v9 = vsub.f32 %v1024_v50, %v1032_v8 }
 0x4e2   :  { %v1045_v22 = vmul.f32 1.442695, %v1040_v9 }
 0x4e3   :  { %v1035_v10 = vpop.xlane.xlu0 %1034 }
 0x4e4   :  { %1626 = vpow2.f32 %v1045_v22  ;;  %v1041_v11 = vsub.f32 %v1025_v55, %v1035_v10 }
 0x4e6   :  { %v1047_v12 = vmul.f32 1.442695, %v1041_v11 }
 0x4e7   :  { %v1038_v18 = vpop.xlane.xlu1 %1037 }
 0x4e8   :  { %1628 = vpow2.f32 %v1047_v12  ;;  %v1042_v19 = vsub.f32 %v1026_v62, %v1038_v18 }
 0x4ea   :  { %v1049_v20 = vmul.f32 1.442695, %v1042_v19 }
 0x4ec   :  { %1630 = vpow2.f32 %v1049_v20 }
 0x4ed   :  { %v1625_v58 = vpop.eup %1624 }
 0x4ee   :  { %v1051_v13 = vsel %vm356_vm2, %v1625_v58, 0.0 }
 0x4ef   :  { %1052 = vadd.xlane.f32.xlu0 %v1051_v13 }
 0x4f1   :  { %v1627_v14 = vpop.eup %1626 }
 0x4f2   :  { %v1054_v15 = vsel %vm356_vm2, %v1627_v14, 0.0 }
 0x4f3   :  { %1055 = vadd.xlane.f32.xlu1 %v1054_v15 }
 0x4f5   :  { %v1629_v16 = vpop.eup %1628 }
 0x4f6   :  { %v1057_v17 = vsel %vm356_vm2, %v1629_v16, 0.0 }
 0x4f7   :  { %1058 = vadd.xlane.f32.xlu0 %v1057_v17 }
 0x4f9   :  { %v1631_v21 = vpop.eup %1630 }
 0x4fa   :  { %v1060_v23 = vsel %vm356_vm2, %v1631_v21, 0.0 }
 0x504   :  { %829 = vrot.lane.b32.xlu1 %v1915_v31, %s1781_s5 }
 0x50d   :  { %826 = vrot.lane.b32.xlu0 %v1915_v31, %s1779_s21 }
 0x528   :  { %1061 = vadd.xlane.f32.xlu1 %v1060_v23  ;;  %v1392_v23 = vld [vmem:[%s2099_s9] ss:$0 sm:$0xff] }
 0x539   :  { %832 = vrot.lane.b32.xlu1 %v1915_v31, %s1780_s3 }
 0x578   :  { %v1053_v24 = vpop.xlane.xlu0 %1052 }
 0x579   :  { %1632 = vrcp.f32 %v1053_v24 }
 0x57c   :  { %v1056_v25 = vpop.xlane.xlu1 %1055 }
 0x57d   :  { %1634 = vrcp.f32 %v1056_v25 }
 0x580   :  { %v1059_v27 = vpop.xlane.xlu0 %1058  ;;  %v830_v28 = vpop.permute.xlu1 %829 }
 0x581   :  { %1636 = vrcp.f32 %v1059_v27  ;;  %v837_v35 = vpack.c.bf16 %v830_v28, %v830_v28 }
 0x583   :  { %v1171_v31 = vsel %vm598_vm3, %v837_v35, 0 }
 0x584   :  { %v827_v29 = vpop.permute.xlu0 %826 }
 0x585   :  { %v836_v32 = vpack.c.bf16 %v827_v29, %v827_v29 }
 0x586   :  { %v1633_v33 = vpop.eup %1632 }
 0x587   :  { %v1125_v36 = vsel %vm598_vm3, %v836_v32, 0  ;;  %v1067_v37 = vmul.f32 %v1633_v33, %v1625_v58 }
 0x588   :  { %1543 = vmatpush3.bf16.msra.mxu0 %v1125_v36 }
 0x589   :  { %v1071_v39 = vpack.c.bf16 %v1067_v37, %v1067_v37  ;;  %1554 = vmatprep.subr.bf16.mxu0 %v1777_v0 }
 0x58a   :  { %v1635_v41 = vpop.eup %1634 }
 0x58b   :  { %1539 = vmatmul.mubr.msk.bf16.vlgmr.msra.gmra.mxu1 %vm356_vm2, %v1071_v39  ;;  %v1068_v42 = vmul.f32 %v1635_v41, %v1627_v14 }
 0x58c   :  { %1549 = vmatpush3.bf16.msra.mxu1 %v1171_v31  ;;  %1550 = vmatprep.mubr.msk.bf16.mxu1 %vm1778_vm0, %v1777_v0 }
 0x58d   :  { %v1072_v43 = vpack.c.bf16 %v1068_v42, %v1068_v42  ;;  %1560 = vmatprep.subr.bf16.mxu1 %v1777_v0 }
 0x58e   :  { %v1637_v44 = vpop.eup %1636 }
 0x58f   :  { %1545 = vmatmul.mubr.msk.bf16.vlgmr.msra.gmra.mxu0 %vm356_vm2, %v1072_v43  ;;  %v1069_v45 = vmul.f32 %v1637_v44, %v1629_v16 }
 0x590   :  { %1556 = vmatprep.mubr.msk.bf16.mxu0 %vm1778_vm0, %v1777_v0 }
 0x591   :  { %v1073_v46 = vpack.c.bf16 %v1069_v45, %v1069_v45 }
 0x593   :  { %1551 = vmatmul.mubr.msk.bf16.vlgmr.msra.gmra.mxu1 %vm356_vm2, %v1073_v46 }
 0x594   :  { %1564 = vmatprep.mubr.msk.bf16.mxu1 %vm1778_vm0, %v1777_v0  ;;  %1561 = vmatpush3.bf16.msra.mxu1 %v1606_v54 }
 0x595   :  { %1562 = vmatprep.subr.bf16.mxu1 %v1777_v0 }
 0x598   :  { %1563 = vmatpush3.bf16.msra.mxu1 %v1607_v6 }
 0x5b1   :  { %v1062_v47 = vpop.xlane.xlu1 %1061 }
 0x5b2   :  { %1638 = vrcp.f32 %v1062_v47 }
 0x5b5   :  { %v833_v48 = vpop.permute.xlu1 %832 }
 0x5b6   :  { %v838_v49 = vpack.c.bf16 %v833_v48, %v833_v48 }
 0x5b8   :  { %v1217_v50 = vsel %vm598_vm3, %v838_v49, 0 }
 0x5b9   :  { %1555 = vmatpush3.bf16.msra.mxu0 %v1217_v50 }
 0x5bf   :  { %v1639_v40 = vpop.eup %1638 }
 0x5c0   :  { %v1070_v51 = vmul.f32 %v1639_v40, %v1631_v21 }
 0x5c2   :  { %v1074_v52 = vpack.c.bf16 %v1070_v51, %v1070_v51 }
 0x5c4   :  { %1557 = vmatmul.mubr.msk.bf16.vlgmr.msra.gmra.mxu0 %vm356_vm2, %v1074_v52 }
 0x64b   :  { %v1115_v53 = vpop.f32.mrf.mxu1 }
 0x64d   :  { %v1540_v55 = vpop.f32.mrf.mxu1 }
 0x64f   :  { %v1118_v56 = vpop.f32.mrf.mxu1  ;;  %v1161_v57 = vpop.f32.mrf.mxu0 }
 0x650   :  { %v1585_v59 = vpack.i.bf16 %v1161_v57, %v2027_v30 }
 0x651   :  { %v1541_v60 = vpop.f32.mrf.mxu1  ;;  %v1546_v61 = vpop.f32.mrf.mxu0 }
 0x652   :  { %1586 = vrot.lane.b32.xlu0 %v1585_v59, %s1774_s28 }
 0x653   :  { %v1164_v62 = vpop.f32.mrf.mxu0  ;;  %v1207_v63 = vpop.f32.mrf.mxu1 }
 0x654   :  { %v1590_v1 = vpack.i.bf16 %v1207_v63, %v2029_v34 }
 0x655   :  { %v1547_v2 = vpop.f32.mrf.mxu0  ;;  %v1552_v3 = vpop.f32.mrf.mxu1 }
 0x656   :  { %1591 = vrot.lane.b32.xlu1 %v1590_v1, %s1782_s0 }
 0x657   :  { %v1210_v4 = vpop.f32.mrf.mxu1 }
 0x659   :  { %v1553_v5 = vpop.f32.mrf.mxu1 }
 0x684   :  { %v1253_v0 = vpop.f32.mrf.mxu0 }
 0x685   :  { %v1595_v7 = vpack.i.bf16 %v1253_v0, %v2031_v38 }
 0x686   :  { %v1558_v30 = vpop.f32.mrf.mxu0 }
 0x687   :  { %1596 = vrot.lane.b32.xlu0 %v1595_v7, %s1783_s25 }
 0x688   :  { %v1256_v8 = vpop.f32.mrf.mxu0 }
 0x68a   :  { %v1559_v9 = vpop.f32.mrf.mxu0 }
 0x6c4   :  { %v1587_v22 = vpop.permute.xlu0 %1586 }
 0x6c5   :  { %v1589_v11 = vunpack.i.h.bf16 %v1587_v22  ;;  %v1588_v34 = vunpack.i.l.bf16 %v1587_v22 }
 0x6c7   :  { %v1271_v14 = vsel %vm356_vm2, %v1115_v53, %v1589_v11  ;;  %v792_v15 = vsel %vm356_vm2, %v2025_v26, %v1588_v34 }
 0x6c8   :  { %v1592_v10 = vpop.permute.xlu1 %1591 }
 0x6c9   :  { %v1594_v12 = vunpack.i.h.bf16 %v1592_v10  ;;  %v1593_v58 = vunpack.i.l.bf16 %v1592_v10 }
 0x6cb   :  { %v794_v17 = vsel %vm793_vm5, %v792_v15, %v1593_v58  ;;  %v1272_v18 = vsel %vm793_vm5, %v1271_v14, %v1594_v12 }
 0x6f9   :  { %v1597_v13 = vpop.permute.xlu0 %1596 }
 0x6fa   :  { %v1599_v38 = vunpack.i.h.bf16 %v1597_v13  ;;  %v1598_v16 = vunpack.i.l.bf16 %v1597_v13 }
 0x6fc   :  { %v1273_v19 = vsel %vm795_vm6, %v1272_v18, %v1599_v38  ;;  %v796_v20 = vsel %vm795_vm6, %v794_v17, %v1598_v16 }
 0x6fd   :  { %v1274_v21 = vpack.c.bf16 %v1273_v19, %v796_v20 }
 0x6ff   :  { %1565 = vmatmul.mubr.msk.bf16.vlgmr.msra.gmra.mxu1 %vm130_vm1, %v1274_v21 }
 0x7bf   :  { %v1335_v24 = vpop.f32.mrf.mxu1 }
 0x7c0   :  { %v1336_v25 = vadd.f32 %v1392_v23, %v1335_v24 }
 0x7c1   :  { %v1566_v27 = vpop.f32.mrf.mxu1 }
 0x7c2   :  { %1342 = vst.msk [vmem:[#allocation13] sm:$0xff] %vm130_vm1, %v1336_v25 }
 0x7c3   :  { %v1338_v26 = vpop.f32.mrf.mxu1 }
 0x7c4   :  { %v1339_v28 = vadd.f32 %v1392_v23, %v1338_v26 }
 0x7c5   :  { %v1567_v29 = vpop.f32.mrf.mxu1 }
 0x7c6   :  { %1343 = vst.msk [vmem:[#allocation13 + $0x8] sm:$0xff] %vm130_vm1, %v1339_v28 }
 0x7c7   :  { %1751 = shalt.err (!%p1748_p1)
}
 0x7c8   :  { %1355 = dma.vmem_to_hbm [thread:$0]  %s1350_s30, 256, %s2100_s10, [#allocation6], %s1773_s27, %s1773_s27, %s1774_s28  }
 0x7c9   :  { %1766 = dma.done.wait [#allocation6], 256  }
 0x7ca   :  { %1767 = vsyncadd [#allocation6], 4294967040 }
 0x7cb   :  { %1359 = vsyncpa [#allocation5], 1 }
 0x7cc   :  { %1360 = vsyncpa [#allocation8], 1 }
 0x7cd   :  { %1361 = vsyncpa [#allocation11], 1 }
 0x7ce   :  { %1362 = vsyncpa [#allocation6], 1 }

</bundles_post_ra>
